<compile_context>
chip_gen: v5e
topology: v5e:2x2
jax: 0.10.0
libtpu: 0.0.40
codegen_flags: <defaults>
</compile_context>

<pallas_src>
import jax
import jax.numpy as jnp
from jax.experimental import pallas as pl
from jax.experimental.pallas import tpu as pltpu


def _patch_embed_kernel(x_ref, w_ref, pos_ref, o_ref):
    # x_ref:   (Bt*Sp, Kp)   im2col slab (row 0 of each batch = zeros for cls)
    # w_ref:   (Kp, Ep)      projection weight (transposed, zero-padded)
    # pos_ref: (Sp, Ep)      row 0 = pos[0]+cls ; rows 1..N = pos[1..]+bias ; rest 0
    # o_ref:   (Bt, Sp, Ep)  output block
    Bt, Sp, Ep = o_ref.shape
    proj = jnp.dot(x_ref[...], w_ref[...],
                   preferred_element_type=jnp.float32)          # (Bt*Sp, Ep)
    proj = proj.reshape(Bt, Sp, Ep)                              # layout no-op (Sp % 8 == 0)
    # Single aligned full-block store (no masked vst, no sublane relayout).
    o_ref[...] = (proj + pos_ref[...].astype(jnp.float32)[None]).astype(o_ref.dtype)


def _round_up(v, m):
    return m * (-(-v // m))


def _pick_bt(B, Sp, Kp, Ep, x_bytes, out_bytes, *, target_rows=512,
             vmem_budget_bytes=40 << 20):
    """Batch elements per grid step: divides B, fits double-buffered VMEM,
    prefers >= 2 grid steps (v7x megacore), and Bt*Sp >= target_rows when possible."""
    def footprint(bt):
        rows = bt * Sp
        return (2 * rows * Kp * x_bytes          # x tile (double-buffered)
                + 2 * rows * Ep * out_bytes      # out tile
                + 2 * Kp * Ep * x_bytes          # weight (constant, 2 bufs)
                + 2 * Sp * Ep * 4)               # pos (f32, constant, 2 bufs)

    divisors = [d for d in range(1, B + 1) if B % d == 0]
    fitting = [d for d in divisors if footprint(d) <= vmem_budget_bytes] or [1]
    pref = [d for d in fitting if B // d >= 2] or fitting
    reach = [d for d in pref if d * Sp >= target_rows]
    bt = min(reach) if reach else max(pref)
    return bt, footprint(bt)


def patch_embedding(x, w, b, cls_token, pos_embed, *, patch_size,
                    matmul_dtype=None):
    """x: (B, C, H, W); w: (E, C, P, P); b: (E,); cls: (1,1,E); pos: (1,1+N,E)."""
    B, C, H, W = x.shape
    P = patch_size
    E = w.shape[0]
    nH, nW = H // P, W // P
    N = nH * nW
    K = C * P * P

    S = 1 + N
    Sp = _round_up(S, 8)            # sequence rows, 8-aligned per batch element
    Kp = _round_up(K, 128)          # contraction dim, lane-dense
    Ep = _round_up(E, 128)          # embedding dim, lane-dense

    # im2col (channel-major within a patch, matching Conv2d OIHW flattening),
    # with a leading zero row per batch element (becomes the cls row) and
    # zero padding rows/cols up to (Sp, Kp).
    patches = x.reshape(B, C, nH, P, nW, P)
    patches = patches.transpose(0, 2, 4, 1, 3, 5).reshape(B, N, K)
    slab = jnp.zeros((B, Sp, Kp), dtype=x.dtype)
    slab = slab.at[:, 1:1 + N, :K].set(patches)
    slab = slab.reshape(B * Sp, Kp)

    # Projection weight, transposed and zero-padded to (Kp, Ep).
    w_mat = jnp.zeros((Kp, Ep), dtype=w.dtype)
    w_mat = w_mat.at[:K, :E].set(w.reshape(E, K).T)

    # Fold conv bias and cls token into the positional embedding (f32).
    pos_core = pos_embed.reshape(S, E).astype(jnp.float32)
    pos_core = pos_core.at[1:].add(b.reshape(1, E).astype(jnp.float32))
    pos_core = pos_core.at[0].add(cls_token.reshape(E).astype(jnp.float32))
    pos_eff = jnp.zeros((Sp, Ep), dtype=jnp.float32)
    pos_eff = pos_eff.at[:S, :E].set(pos_core)

    if matmul_dtype is not None:
        slab = slab.astype(matmul_dtype)
        w_mat = w_mat.astype(matmul_dtype)

    x_bytes = jnp.dtype(slab.dtype).itemsize
    out_bytes = jnp.dtype(x.dtype).itemsize
    Bt, footprint = _pick_bt(B, Sp, Kp, Ep, x_bytes, out_bytes)
    vmem_limit = min(100 << 20, max(32 << 20, int(footprint) + (8 << 20)))

    out = pl.pallas_call(
        _patch_embed_kernel,
        out_shape=jax.ShapeDtypeStruct((B, Sp, Ep), x.dtype),
        grid_spec=pltpu.PrefetchScalarGridSpec(
            num_scalar_prefetch=0,
            grid=(B // Bt,),
            in_specs=[
                pl.BlockSpec((Bt * Sp, Kp), lambda bi: (bi, 0)),
                pl.BlockSpec((Kp, Ep), lambda bi: (0, 0)),
                pl.BlockSpec((Sp, Ep), lambda bi: (0, 0)),
            ],
            out_specs=pl.BlockSpec((Bt, Sp, Ep), lambda bi: (bi, 0, 0)),
        ),
        compiler_params=pltpu.CompilerParams(
            dimension_semantics=("parallel",),
            vmem_limit_bytes=vmem_limit),
    )(slab, w_mat, pos_eff)

    # Strip sequence / lane padding (no-op when S % 8 == 0 and E % 128 == 0).
    if Sp != S or Ep != E:
        out = out[:, :S, :E]
    return out


def patch_embedding_ref(x, w, b, cls_token, pos_embed, *, patch_size):
    """Pure-JAX reference matching the PyTorch forward."""
    proj = jax.lax.conv_general_dilated(
        x, w, window_strides=(patch_size, patch_size), padding="VALID",
        dimension_numbers=("NCHW", "OIHW", "NCHW"))            # (B, E, nH, nW)
    proj = proj + b.reshape(1, -1, 1, 1)
    B_, E, nH, nW = proj.shape
    seq = proj.reshape(B_, E, nH * nW).transpose(0, 2, 1)      # (B, N, E)
    cls = jnp.broadcast_to(cls_token, (B_, 1, E))
    return jnp.concatenate([cls, seq], axis=1) + pos_embed


if __name__ == "__main__":
    # Small shapes consistent with the module: in_channels=4, patch_size=4,
    # img_size=16, emb_size=32 -> n_patches = 16, seq = 17.
    B, C, H, W = 2, 4, 16, 16
    P, E = 4, 32
    N = (H // P) * (W // P)

    key = jax.random.PRNGKey(0)
    kx, kw, kb, kc, kp = jax.random.split(key, 5)
    x = jax.random.normal(kx, (B, C, H, W), dtype=jnp.float32)
    w = jax.random.normal(kw, (E, C, P, P), dtype=jnp.float32) * 0.02
    b = jax.random.normal(kb, (E,), dtype=jnp.float32) * 0.02
    cls_token = jax.random.normal(kc, (1, 1, E), dtype=jnp.float32)
    pos_embed = jax.random.normal(kp, (1, 1 + N, E), dtype=jnp.float32)

    ref = patch_embedding_ref(x, w, b, cls_token, pos_embed, patch_size=P)

    # f32 path (exact-ish).
    out = patch_embedding(x, w, b, cls_token, pos_embed, patch_size=P)
    out = jax.block_until_ready(out)
    assert out.shape == (B, 1 + N, E), out.shape
    assert jnp.allclose(out, ref, atol=1e-4, rtol=1e-4), "f32 path mismatch"

    # bf16-operand path (recommended default on v6e/v7x; looser tolerance).
    out_bf16 = patch_embedding(x, w, b, cls_token, pos_embed, patch_size=P,
                               matmul_dtype=jnp.bfloat16)
    out_bf16 = jax.block_until_ready(out_bf16)
    assert jnp.allclose(out_bf16, ref, atol=2e-2, rtol=2e-2), "bf16 path mismatch"

    print("KERNEL_OK")
</pallas_src>

<mosaic_0001>
module attributes {stable_mosaic.version = 11 : i64} {
  func.func @_patch_embed_kernel(%arg0: i32, %arg1: memref<24x128xf32, #tpu.memory_space<vmem>>, %arg2: memref<128x128xf32, #tpu.memory_space<vmem>>, %arg3: memref<24x128xf32, #tpu.memory_space<vmem>>, %arg4: memref<1x24x128xf32, #tpu.memory_space<vmem>>) attributes {dimension_semantics = [#tpu.dimension_semantics<parallel>], iteration_bounds = array<i64: 2>, scalar_prefetch = 0 : i64, scratch_operands = 0 : i64, tpu.core_type = #tpu.core_type<tc>, window_params = [{transform_indices = @transform_0, window_bounds = array<i64: 24, 128>}, {pipeline_mode = #tpu.pipeline_mode<synchronous>, transform_indices = @transform_1, window_bounds = array<i64: 128, 128>}, {pipeline_mode = #tpu.pipeline_mode<synchronous>, transform_indices = @transform_2, window_bounds = array<i64: 24, 128>}, {transform_indices = @transform_3, window_bounds = array<i64: 1, 24, 128>}]} {
    %c0 = arith.constant 0 : index
    %c0_0 = arith.constant 0 : index
    %0 = vector.load %arg1[%c0, %c0_0] : memref<24x128xf32, #tpu.memory_space<vmem>>, vector<24x128xf32>
    %c0_1 = arith.constant 0 : index
    %c0_2 = arith.constant 0 : index
    %1 = vector.load %arg2[%c0_1, %c0_2] : memref<128x128xf32, #tpu.memory_space<vmem>>, vector<128x128xf32>
    %cst = arith.constant dense<0.000000e+00> : vector<24x128xf32>
    %2 = tpu.matmul %0, %1, %cst {dimension_numbers = #tpu.dot_dimension_numbers<[1], [0], [0], [1], [0, 0, 1, 1], [], []>} : vector<24x128xf32>, vector<128x128xf32>, vector<24x128xf32> -> vector<24x128xf32>
    %3 = vector.shape_cast %2 : vector<24x128xf32> to vector<1x24x128xf32>
    %c0_3 = arith.constant 0 : index
    %c0_4 = arith.constant 0 : index
    %4 = vector.load %arg3[%c0_3, %c0_4] : memref<24x128xf32, #tpu.memory_space<vmem>>, vector<24x128xf32>
    %5 = vector.shape_cast %4 : vector<24x128xf32> to vector<1x24x128xf32>
    %6 = arith.addf %3, %5 : vector<1x24x128xf32>
    %c0_5 = arith.constant 0 : index
    %c0_6 = arith.constant 0 : index
    %c0_7 = arith.constant 0 : index
    %7 = vector.load %arg4[%c0_5, %c0_6, %c0_7] : memref<1x24x128xf32, #tpu.memory_space<vmem>>, vector<1x24x128xf32>
    tpu.vector_store %arg4[%c0_5, %c0_6, %c0_7], %6 {strides = array<i32>} : memref<1x24x128xf32, #tpu.memory_space<vmem>>, vector<1x24x128xf32>,
    return
  }
  func.func @transform_0(%arg0: i32) -> (i32, i32) {
    %c0_i32 = arith.constant 0 : i32
    %c0_i32_0 = arith.constant 0 : i32
    return %arg0, %c0_i32 : i32, i32
  }
  func.func @transform_1(%arg0: i32) -> (i32, i32) {
    %c0_i32 = arith.constant 0 : i32
    %c0_i32_0 = arith.constant 0 : i32
    %c0_i32_1 = arith.constant 0 : i32
    return %c0_i32, %c0_i32_0 : i32, i32
  }
  func.func @transform_2(%arg0: i32) -> (i32, i32) {
    %c0_i32 = arith.constant 0 : i32
    %c0_i32_0 = arith.constant 0 : i32
    %c0_i32_1 = arith.constant 0 : i32
    return %c0_i32, %c0_i32_0 : i32, i32
  }
  func.func @transform_3(%arg0: i32) -> (i32, i32, i32) {
    %c0_i32 = arith.constant 0 : i32
    %c0_i32_0 = arith.constant 0 : i32
    %c0_i32_1 = arith.constant 0 : i32
    return %arg0, %c0_i32, %c0_i32_0 : i32, i32, i32
  }
}

</mosaic_0001>

<bundles_post_ra>
// kernel: tpu_custom_call.1
= control target key start
LH: loop header
LB: loop body
LE: loop exit
PB: predicated region body
PF: predicated region fallthrough
CT: control target
= control target key end

     0   :  { %8 = vsyncpa [#allocation3], 0  ;;  %s853_s0 = inlined_call_operand.hbm [shape: f32[48,128], index: 0, kind: input, shape index: {}]   ;;  %s854_s1 = inlined_call_operand.hbm [shape: f32[128,128], index: 1, kind: input, shape index: {}]   ;;  %s855_s2 = inlined_call_operand.hbm [shape: f32[24,128], index: 2, kind: input, shape index: {}]   ;;  %s856_s3 = inlined_call_operand.hbm [shape: f32[2,24,128], index: 3, kind: output, shape index: {}]  }
   0x1   :  { %10 = vsyncpa [#allocation3 + $0x1], 0 }
   0x2   :  { %11 = vsyncpa [#allocation6], 0 }
   0x3   :  { %12 = vsyncpa [#allocation4], 0 }
   0x4   :  { %14 = vsyncpa [#allocation4 + $0x1], 0  ;;  %s694_s12 = smov 0   ;;  %s696_s13 = smov 0  }
   0x5   :  { %s698_s14 = smov 0   ;;  %s700_s15 = smov 0  }
   0x6 LB: > { %s715_s16 = sadd.s32 4294967295, %s666_s15   ;;  %s387_s17 = sadd.s32 4294967294, %s666_s15   ;;  %s666_s15 = sphi %s700_s15, %s868_s15   ;;  %s662_s14 = sphi %s698_s14, %s867_s14   ;;  %s658_s13 = sphi %s696_s13, %s866_s13   ;;  %s654_s12 = sphi %s694_s12, %s865_s12  }
   0x7   : > { %p40_p0 = scmp.ne.s32.totalorder %s658_s13, %s654_s12  ;;  %p41_p1 = scmp.eq.s32.totalorder %s715_s16, 0 }
   0x8   : > { %p106_p2 = scmp.eq.s32.totalorder %s715_s16, 1  ;;  %p112_p3 = scmp.eq.s32.totalorder %s387_s17, 1 }
   0x9   : > { %p724_p4 = por %p41_p1, %p40_p0  ;;  %p388_p5 = scmp.ge.s32.totalorder %s666_s15, 1 }
   0xa   : > { %p729_p6 = por %p112_p3, %p40_p0  ;;  %p119_p7 = scmp.lt.s32.totalorder %s666_s15, 3 }
   0xb   : > { %s130_s22 = sshll.u32 %s854_s1, 4  ;;  %s668_s24 = smov [#allocation5]   ;;  %s131_s22 = int_to_ptr.hbm [resolvable:$true] %s130_s22 }
   0xc   : > { %p737_p8 = pnand %p388_p5, %p119_p7  ;;  %s132_s25 = sshll.u32 %s668_s24, 4  ;;  %s133_s25 = int_to_ptr.vmem [resolvable:$true] %s132_s25 }
   0xd   : > { %s144_s28 = sshll.u32 %s855_s2, 4  ;;  %s857_s29 = smov 128   ;;  %s145_s28 = int_to_ptr.hbm [resolvable:$true] %s144_s28 }
   0xe   : > { %p447_p9 = pneg %p737_p8  ;;  %s670_s30 = smov 8  }
   0xf   : > { %s671_s4 = smov [#allocation7]   ;;  %s756_s6 = sadd.s32 1, %s666_s15  }
  0x10   : > { %p448_p10 = pnand %p447_p9, %p41_p1  ;;  %s146_s5 = sshll.u32 %s671_s4, 4  ;;  %s147_s5 = int_to_ptr.vmem [resolvable:$true] %s146_s5 }
  0x11   : > { %s27_s7 = sadd.s32 1, %s662_s14  ;;  %s24_s8 = ssub.s32 %s666_s15, %s756_s6 }
  0x12   : > { %450 = dma.hbm_to_vmem [thread:$0]  (!%p448_p10), %s131_s22, 2048, %s133_s25, [#allocation6], %s857_s29, %s857_s29, %s670_s30  }
  0x13   : > { %453 = dma.hbm_to_vmem [thread:$0]  (!%p448_p10), %s145_s28, 384, %s147_s5, [#allocation6], %s857_s29, %s857_s29, %s670_s30  }
  0x14   : > { %p34_p12 = scmp.ne.s32.totalorder %s662_s14, %s658_s13  ;;  %p25_p13 = scmp.eq.s32.totalorder %s24_s8, 0 }
  0x15   : > { %p35_p0 = scmp.eq.s32.totalorder %s666_s15, 0  ;;  %p464_p5 = scmp.lt.s32.totalorder %s666_s15, 2 }
  0x16   : > { %p766_p3 = por %p106_p2, %p34_p12  ;;  %s160_s11 = sand.u32 1, %s662_s14  }
  0x17   : > { %s772_s10 = scalar_select %p25_p13, %s662_s14, %s27_s7  }
  0x18   : > { %p36_p7 = por %p35_p0, %p34_p12  ;;  %s432_s17 = smul.u32 24, %s160_s11 }
  0x19   : > { %s399_s20 = smul.u32 24, %s666_s15  ;;  %s161_s4 = scalar_lea.sflag [#allocation3], %s160_s11 }
  0x1a   : > { %p776_p9 = pnand %p464_p5, %p36_p7  ;;  %s164_s26 = scalar_lea.vmem [#allocation2], %s432_s17 }
  0x1b   : > { %s169_s25 = scalar_lea.hbm %s853_s0, %s399_s20  ;;  %s172_s27 = sshll.u32 %s164_s26, 4  ;;  %s173_s27 = int_to_ptr.vmem [resolvable:$true] %s172_s27 }
  0x1c   : > { %s170_s28 = sshll.u32 %s169_s25, 4  ;;  %p570_p10 = pneg %p776_p9  ;;  %s171_s28 = int_to_ptr.hbm [resolvable:$true] %s170_s28 }
  0x1d   : > { %s566_s5 = sshra.s32 %s171_s28, 4  ;;  %s573_s22 = scalar_lea.hbm %s853_s0, 48  ;;  %s567_s5 = int_to_ptr.hbm [resolvable:$true] %s566_s5 }
  0x1e   : > { %s568_s7 = scalar_lea.hbm %s567_s5, 24  ;;  %p574_p0 = scmp.lt.s32.totalorder %s567_s5, %s853_s0 }
  0x1f   : > { %p569_p2 = scmp.ne.s32.totalorder %s567_s5, %s568_s7  ;;  %p575_p5 = scmp.lt.s32.totalorder %s573_s22, %s568_s7 }
  0x21   : > { %p571_p12 = pnand %p570_p10, %p569_p2  ;;  %p576_p7 = por %p575_p5, %p574_p0 }
  0x23   : > { %p572_p13 = pneg %p571_p12 }
  0x25   : > { %p577_p11 = pnand %p576_p7, %p572_p13 }
  0x27   : > { %580 = shalt.err (!%p577_p11)
}
  0x28   : > { %s863_s11 = smov 128   ;;  %184 = sbr.rel (%p737_p8) target bundleno = 219 (0xdb), region = 32 }
  0x29   : > { %457 = dma.hbm_to_vmem [thread:$0]  (!%p776_p9), %s171_s28, 384, %s173_s27, %s161_s4, %s863_s11, %s863_s11, %s670_s30  }
  0x2a   : > { %s799_s29 = sand.u32 (!%p737_p8), 1, %s658_s13  }
  0x2b   : > { %s433_s17 = smul.u32 (!%p737_p8), 24, %s799_s29  ;;  %s187_s25 = scalar_lea.sflag (!%p737_p8), [#allocation3], %s799_s29 }
  0x2d   : > { %s805_s26 = scalar_lea.vmem [#allocation2], %s433_s17 }
  0x2e   : > { %641 = dma.done.wait (%p724_p4), %s187_s25, 384  }
  0x2f   : > { %643 = vsyncadd (%p724_p4), %s187_s25, 4294966912 }
  0x30   : > { %645 = dma.done.wait (%p41_p1), [#allocation6], 2432  }
  0x31   : > { %647 = vsyncadd (%p41_p1), [#allocation6], 4294964864  ;;  %v243_v0 = vld [vmem:[#allocation5 + $0x78] sm:$0xff]  ;;  %v242_v1 = vld [vmem:[#allocation5 + $0x70] sm:$0xff]  ;;  %s434_s18 = smul.u32 24, %s715_s16  ;;  %s223_s27 = scalar_lea.vmem [#allocation8], %s433_s17 }
  0x32   : > { %401 = vmatpush.msra.mxu2 %v243_v0  ;;  %244 = vmatpush.msra.mxu0 %v243_v0  ;;  %v241_v2 = vld [vmem:[#allocation5 + $0x68] sm:$0xff]  ;;  %v240_v3 = vld [vmem:[#allocation5 + $0x60] sm:$0xff]  ;;  %v239_v4 = vld [vmem:[#allocation5 + $0x58] sm:$0xff]  ;;  %s292_s28 = sshll.u32 %s223_s27, 4  ;;  %s280_s16 = scalar_lea.sflag [#allocation4], %s799_s29  ;;  %s293_s28 = int_to_ptr.vmem [resolvable:$true] %s292_s28 }
  0x33   : > { %400 = vmatpush.msra.mxu1 %v243_v0  ;;  %v238_v5 = vld [vmem:[#allocation5 + $0x50] sm:$0xff]  ;;  %v237_v6 = vld [vmem:[#allocation5 + $0x48] sm:$0xff]  ;;  %v236_v7 = vld [vmem:[#allocation5 + $0x40] sm:$0xff]  ;;  %s291_s21 = scalar_lea.hbm %s856_s3, %s434_s18  ;;  %s616_s24 = scalar_lea.hbm %s856_s3, 48 }
  0x34   : > { %403 = vmatpush.msra.mxu2 %v242_v1  ;;  %245 = vmatpush.msra.mxu0 %v242_v1  ;;  %v235_v8 = vld [vmem:[#allocation5 + $0x38] sm:$0xff]  ;;  %v234_v9 = vld [vmem:[#allocation5 + $0x30] sm:$0xff]  ;;  %v233_v10 = vld [vmem:[#allocation5 + $0x28] sm:$0xff]  ;;  %s294_s4 = sshll.u32 %s291_s21, 4  ;;  %s295_s4 = int_to_ptr.hbm [resolvable:$true] %s294_s4 }
  0x35   : > { %402 = vmatpush.msra.mxu1 %v242_v1  ;;  %v232_v11 = vld [vmem:[#allocation5 + $0x20] sm:$0xff]  ;;  %v231_v12 = vld [vmem:[#allocation5 + $0x18] sm:$0xff]  ;;  %v230_v13 = vld [vmem:[#allocation5 + $0x10] sm:$0xff]  ;;  %s610_s5 = sshra.s32 %s295_s4, 4  ;;  %s611_s5 = int_to_ptr.hbm [resolvable:$true] %s610_s5 }
  0x36   : > { %405 = vmatpush.msra.mxu2 %v241_v2  ;;  %246 = vmatpush.msra.mxu0 %v241_v2  ;;  %v229_v14 = vld [vmem:[#allocation5 + $0x8] sm:$0xff]  ;;  %v228_v15 = vld [vmem:[#allocation5] sm:$0xff]  ;;  %v226_v18 = vld [vmem:[%s805_s26 + $0x8] sm:$0xff]  ;;  %s612_s7 = scalar_lea.hbm %s611_s5, 24  ;;  %p617_p11 = scmp.lt.s32.totalorder %s611_s5, %s856_s3 }
  0x37   : > { %404 = vmatpush.msra.mxu1 %v241_v2  ;;  %v227_v16 = vld [vmem:[%s805_s26 + $0x10] sm:$0xff]  ;;  %v225_v17 = vld [vmem:[%s805_s26] sm:$0xff]  ;;  %p613_p1 = scmp.ne.s32.totalorder %s611_s5, %s612_s7  ;;  %p618_p9 = scmp.lt.s32.totalorder %s616_s24, %s612_s7 }
  0x38   : > { %407 = vmatpush.msra.mxu2 %v240_v3  ;;  %247 = vmatpush.msra.mxu0 %v240_v3  ;;  %v270_v19 = vld [vmem:[#allocation7] sm:$0xff]  ;;  %v271_v20 = vld [vmem:[#allocation7 + $0x8] sm:$0xff]  ;;  %v272_v25 = vld [vmem:[#allocation7 + $0x10] sm:$0xff] }
  0x39   : > { %406 = vmatpush.msra.mxu1 %v240_v3  ;;  %p614_p4 = pnand %p613_p1, %p766_p3  ;;  %p619_p2 = por %p618_p9, %p617_p11 }
  0x3a   : > { %409 = vmatpush.msra.mxu2 %v239_v4  ;;  %248 = vmatpush.msra.mxu0 %v239_v4 }
  0x3b   : > { %408 = vmatpush.msra.mxu1 %v239_v4  ;;  %p615_p8 = pneg %p614_p4 }
  0x3c   : > { %411 = vmatpush.msra.mxu2 %v238_v5  ;;  %249 = vmatpush.msra.mxu0 %v238_v5 }
  0x3d   : > { %410 = vmatpush.msra.mxu1 %v238_v5  ;;  %p620_p10 = pnand %p619_p2, %p615_p8 }
  0x3e   : > { %413 = vmatpush.msra.mxu2 %v237_v6  ;;  %250 = vmatpush.msra.mxu0 %v237_v6 }
  0x3f   : > { %412 = vmatpush.msra.mxu1 %v237_v6 }
  0x40   : > { %415 = vmatpush.msra.mxu2 %v236_v7  ;;  %251 = vmatpush.msra.mxu0 %v236_v7 }
  0x41   : > { %414 = vmatpush.msra.mxu1 %v236_v7 }
  0x42   : > { %417 = vmatpush.msra.mxu2 %v235_v8  ;;  %252 = vmatpush.msra.mxu0 %v235_v8 }
  0x43   : > { %416 = vmatpush.msra.mxu1 %v235_v8 }
  0x44   : > { %419 = vmatpush.msra.mxu2 %v234_v9  ;;  %253 = vmatpush.msra.mxu0 %v234_v9 }
  0x45   : > { %418 = vmatpush.msra.mxu1 %v234_v9 }
  0x46   : > { %421 = vmatpush.msra.mxu2 %v233_v10  ;;  %254 = vmatpush.msra.mxu0 %v233_v10 }
  0x47   : > { %420 = vmatpush.msra.mxu1 %v233_v10 }
  0x48   : > { %423 = vmatpush.msra.mxu2 %v232_v11  ;;  %255 = vmatpush.msra.mxu0 %v232_v11 }
  0x49   : > { %422 = vmatpush.msra.mxu1 %v232_v11 }
  0x4a   : > { %425 = vmatpush.msra.mxu2 %v231_v12  ;;  %256 = vmatpush.msra.mxu0 %v231_v12 }
  0x4b   : > { %424 = vmatpush.msra.mxu1 %v231_v12 }
  0x4c   : > { %427 = vmatpush.msra.mxu2 %v230_v13  ;;  %257 = vmatpush.msra.mxu0 %v230_v13 }
  0x4d   : > { %426 = vmatpush.msra.mxu1 %v230_v13 }
  0x4e   : > { %429 = vmatpush.msra.mxu2 %v229_v14  ;;  %258 = vmatpush.msra.mxu0 %v229_v14 }
  0x4f   : > { %428 = vmatpush.msra.mxu1 %v229_v14 }
  0x50   : > { %431 = vmatpush.msra.mxu2 %v228_v15  ;;  %259 = vmatpush.msra.mxu0 %v228_v15 }
  0x51   : > { %266 = vmatmul.f32.vlgmr.msra.gmra.mxu2 %v227_v16  ;;  %430 = vmatpush.msra.mxu1 %v228_v15 }
  0x52   : > { %260 = vmatmul.f32.vlgmr.msra.gmra.mxu0 %v225_v17  ;;  %263 = vmatmul.f32.vlgmr.msra.gmra.mxu1 %v226_v18 }
  0xcf   : > { %v261_v21 = vpop.f32.mrf.mxu0  ;;  %v264_v22 = vpop.f32.mrf.mxu1 }
  0xd0   : > { %v273_v23 = vadd.f32 %v270_v19, %v261_v21  ;;  %v274_v24 = vadd.f32 %v271_v20, %v264_v22 }
  0xd2   : > { %276 = vst [vmem:[%s223_s27] sm:$0xff] %v273_v23 }
  0xd3   : > { %277 = vst [vmem:[%s223_s27 + $0x8] sm:$0xff] %v274_v24 }
  0xd4   : > { %v267_v26 = vpop.f32.mrf.mxu2 }
  0xd5   : > { %v275_v27 = vadd.f32 %v272_v25, %v267_v26 }
  0xd7   : > { %278 = vst [vmem:[%s223_s27 + $0x10] sm:$0xff] %v275_v27 }
  0xd8   : > { %623 = shalt.err (!%p620_p10)
}
  0xd9   : > { %s672_s29 = smov 128   ;;  %s673_s17 = smov 8  }
  0xda   : > { %445 = dma.vmem_to_hbm [thread:$0]  (%p766_p3), %s293_s28, 384, %s295_s4, %s280_s16, %s672_s29, %s672_s29, %s673_s17  }
  0xdb PF: > { %s309_s25 = sand.u32 1, %s654_s12   ;;  %p864_p12 = scmp.ge.s32.totalorder %s666_s15, 2 }
  0xdc   : > { %s310_s26 = scalar_lea.sflag [#allocation4], %s309_s25 }
  0xdd   : > { %p459_p13 = pnand %p864_p12, %p729_p6 }
  0xdf   : > { %p460_p0 = pneg %p459_p13 }
  0xe1   : > { %649 = dma.done.wait (%p460_p0), %s310_s26, 384  }
  0xe2   : > { %651 = vsyncadd (%p460_p0), %s310_s26, 4294966912  ;;  %p17_p5 = scmp.ge.s32.totalorder %s756_s6, 4   ;;  %s865_s12 = smov %s658_s13 }
  0xe3   : > { %s866_s13 = smov %s662_s14  ;;  %s867_s14 = smov %s772_s10 }
  0xe4   : > { %s868_s15 = smov %s756_s6  ;;  %19 = sbr.rel (!%p17_p5) target bundleno = 6 (0x6), region = 85 }
  0xe9   :  { %316 = vsyncpa [#allocation3], 1 }
  0xea   :  { %318 = vsyncpa [#allocation3 + $0x1], 1 }
  0xeb   :  { %319 = vsyncpa [#allocation6], 1 }
  0xec   :  { %320 = vsyncpa [#allocation4], 1 }
  0xed   :  { %322 = vsyncpa [#allocation4 + $0x1], 1 }

</bundles_post_ra>
